<compile_context>
chip_gen: v5e
topology: v5e:2x2
jax: 0.10.0
libtpu: 0.0.40
codegen_flags: <defaults>
</compile_context>

<pallas_src>
import jax
import jax.numpy as jnp
from jax.experimental import pallas as pl
from jax.experimental.pallas import tpu as pltpu


# ----------------------------------------------------------------------------
# Kernels
# ----------------------------------------------------------------------------
def _starrelu_vec_kernel(x_ref, s_ref, b_ref, o_ref):
    """scale/bias are small VMEM tiles ((tile_r,1) or (1,tile_c)) that broadcast."""
    x = x_ref[...]
    s = s_ref[...]
    b = b_ref[...]
    zero = jnp.zeros((), dtype=x.dtype)
    o_ref[...] = jnp.maximum(x * s, zero) + jnp.maximum(x * b, zero)


def _starrelu_scalar_kernel(x_ref, s_ref, b_ref, o_ref):
    """scale/bias are (1,1) SMEM scalars."""
    x = x_ref[...]
    s = s_ref[0, 0]
    b = b_ref[0, 0]
    zero = jnp.zeros((), dtype=x.dtype)
    o_ref[...] = jnp.maximum(x * s, zero) + jnp.maximum(x * b, zero)


# ----------------------------------------------------------------------------
# Generation-aware sizing helpers (all trace-time Python)
# ----------------------------------------------------------------------------
def _chip_profile():
    """Return (target_block_bytes, min_parallel_blocks) for the current chip."""
    try:
        kind = jax.devices()[0].device_kind.lower()
    except Exception:  # pragma: no cover - defensive
        kind = ""
    if "v7" in kind:
        # 3.2 TB/s: bigger blocks to amortize the ~0.35us step overhead,
        # and >=2 blocks so both TensorCores stream. 2*(6+6) MiB < 32 MiB default.
        return 6 << 20, 2
    if "v6" in kind:
        # 1.4 TB/s: 4 MiB blocks; x+out double-buffered = 16 MiB < 32 MiB default.
        return 4 << 20, 1
    # v5e (16 MiB default scoped VMEM) / unknown: keep 2 MiB blocks.
    return 2 << 20, 1


def _sublane_multiple(dtype):
    itemsize = jnp.dtype(dtype).itemsize
    return {1: 32, 2: 16}.get(itemsize, 8)


def _choose_tiles(n_rows, n_cols, dtype, target_bytes, min_blocks):
    """Pick (tile_r, tile_c) obeying the (sub,128) block constraint."""
    itemsize = jnp.dtype(dtype).itemsize
    sub = _sublane_multiple(dtype)

    # Lane (last) axis: take full width unless even `sub` rows of it would
    # blow the target; then chunk in multiples of 128.
    if n_cols <= 128 or n_cols * sub * itemsize <= target_bytes:
        tile_c = n_cols
    else:
        tile_c = max(128, (target_bytes // (sub * itemsize)) // 128 * 128)
        tile_c = min(tile_c, (n_cols // 128) * 128)

    # Sublane (row) axis: multiple of `sub`, sized so the block is ~target bytes.
    rows = target_bytes // max(1, tile_c * itemsize)
    rows = max(sub, (rows // sub) * sub)
    tile_r = n_rows if rows >= n_rows else rows

    # Megacore (v7x): never collapse a non-trivial array to a single block.
    total_bytes = n_rows * n_cols * itemsize
    if (min_blocks > 1 and tile_r >= n_rows and tile_c >= n_cols
            and total_bytes > (1 << 20)):
        if n_rows >= 2 * sub:
            half = -(-(n_rows // 2) // sub) * sub  # ceil(n_rows/2) to sub multiple
            tile_r = min(half, max(sub, (n_rows // 2) // sub * sub) or sub)
            tile_r = half if half < n_rows else max(sub, (n_rows // 2) // sub * sub)
        elif n_cols >= 256:
            tile_c = max(128, ((n_cols // 2) // 128) * 128)
    return tile_r, tile_c


def _lane_dense_width(total, max_width=8192):
    """Largest multiple of 128 (<= max_width) that divides `total`, or None."""
    best = None
    cap = min(total, max_width)
    w = 128
    while w <= cap:
        if total % w == 0:
            best = w
        w += 128
    return best


# ----------------------------------------------------------------------------
# 2D driver
# ----------------------------------------------------------------------------
def _starrelu_2d(x2d, s_arr, b_arr, *, scale_layout):
    """Elementwise StarReLU on a 2D view.

    scale_layout:
      "col":    s_arr/b_arr have shape (R, 1)   (per-row broadcast, VMEM)
      "row":    s_arr/b_arr have shape (1, C)   (per-col broadcast, VMEM)
      "scalar": s_arr/b_arr have shape (1, 1)   (SMEM scalars)
    """
    R, C = x2d.shape
    dtype = x2d.dtype
    itemsize = jnp.dtype(dtype).itemsize
    target_bytes, min_blocks = _chip_profile()
    tile_r, tile_c = _choose_tiles(R, C, dtype, target_bytes, min_blocks)
    grid = (pl.cdiv(R, tile_r), pl.cdiv(C, tile_c))

    x_spec = pl.BlockSpec((tile_r, tile_c), lambda i, j: (i, j))
    o_spec = pl.BlockSpec((tile_r, tile_c), lambda i, j: (i, j))

    if scale_layout == "scalar":
        kernel = _starrelu_scalar_kernel
        smem_spec = pl.BlockSpec(memory_space=pltpu.MemorySpace.SMEM)
        in_specs = [x_spec, smem_spec, smem_spec]
    else:
        kernel = _starrelu_vec_kernel
        if scale_layout == "col":
            s_spec = pl.BlockSpec((tile_r, 1), lambda i, j: (i, 0))
        else:  # "row"
            s_spec = pl.BlockSpec((1, tile_c), lambda i, j: (0, j))
        in_specs = [x_spec, s_spec, s_spec]

    nbytes = R * C * itemsize
    cost = pl.CostEstimate(
        flops=5 * R * C,            # 2 mul + 2 max + 1 add per element
        transcendentals=0,
        bytes_accessed=2 * nbytes,  # read x once, write out once
    )

    return pl.pallas_call(
        kernel,
        out_shape=jax.ShapeDtypeStruct((R, C), dtype),
        grid_spec=pltpu.PrefetchScalarGridSpec(
            num_scalar_prefetch=0,
            grid=grid,
            in_specs=in_specs,
            out_specs=o_spec,
        ),
        compiler_params=pltpu.CompilerParams(
            dimension_semantics=("parallel", "parallel")),
        cost_estimate=cost,
    )(x2d, s_arr, b_arr)


# ----------------------------------------------------------------------------
# Public wrapper (mirrors StarReLU.forward)
# ----------------------------------------------------------------------------
def star_relu(x, scale, bias, channel_dim=None):
    """StarReLU forward.

    x: 4D NCHW or 2D (N, C) array.
    scale/bias: shape (C,) if channel_dim is not None, else scalar ().
    """
    dtype = x.dtype

    if x.ndim == 4:
        N, C, H, W = x.shape
        if channel_dim is None:
            # Scalar params: flatten to the most lane-dense 2D view available.
            total = N * C * H * W
            L = _lane_dense_width(total)
            if L is None:
                L = H * W  # fall back to the natural spatial lane axis
            x2d = x.reshape(total // L, L)
            s11 = jnp.asarray(scale, dtype=dtype).reshape(1, 1)
            b11 = jnp.asarray(bias, dtype=dtype).reshape(1, 1)
            out2d = _starrelu_2d(x2d, s11, b11, scale_layout="scalar")
            return out2d.reshape(N, C, H, W)
        else:
            # Per-channel params: (N, C, H, W) -> (N*C, H*W) free reshape,
            # row r belongs to channel r % C.
            # TODO(synk): when H*W is not a multiple of 128 (e.g. 7x7, 14x14),
            # lane utilization drops; padding spatial upstream or using NHWC
            # would recover it, but we keep exact semantics here.
            R, Lsp = N * C, H * W
            x2d = x.reshape(R, Lsp)
            s_col = jnp.broadcast_to(
                jnp.asarray(scale, dtype=dtype), (N, C)).reshape(R, 1)
            b_col = jnp.broadcast_to(
                jnp.asarray(bias, dtype=dtype), (N, C)).reshape(R, 1)
            out2d = _starrelu_2d(x2d, s_col, b_col, scale_layout="col")
            return out2d.reshape(N, C, H, W)

    elif x.ndim == 2:
        N, C = x.shape
        if channel_dim is None:
            s11 = jnp.asarray(scale, dtype=dtype).reshape(1, 1)
            b11 = jnp.asarray(bias, dtype=dtype).reshape(1, 1)
            return _starrelu_2d(x, s11, b11, scale_layout="scalar")
        else:
            s_row = jnp.asarray(scale, dtype=dtype).reshape(1, C)
            b_row = jnp.asarray(bias, dtype=dtype).reshape(1, C)
            return _starrelu_2d(x, s_row, b_row, scale_layout="row")

    else:
        raise ValueError("StarReLU kernel supports 2D (N,C) or 4D NCHW input")


def star_relu_ref(x, scale, bias, channel_dim=None):
    if channel_dim is not None:
        if x.ndim == 4:
            s = scale.reshape(1, -1, 1, 1)
            b = bias.reshape(1, -1, 1, 1)
        else:
            s = scale.reshape(1, -1)
            b = bias.reshape(1, -1)
    else:
        s, b = scale, bias
    return jnp.maximum(x * s, 0.0) + jnp.maximum(x * b, 0.0)


if __name__ == "__main__":
    key = jax.random.PRNGKey(0)

    # --- per-channel case: StarReLU(scale_value=0.75, bias_value=0.25, channel_dim=4)
    N, C, H, W = 2, 4, 16, 16
    scale_value, bias_value = 0.75, 0.25
    x = jax.random.normal(key, (N, C, H, W), dtype=jnp.float32)
    scale = jnp.ones((C,), dtype=jnp.float32) * scale_value  # matches nn.Parameter init
    bias = jnp.ones((C,), dtype=jnp.float32) * bias_value

    out = jax.block_until_ready(star_relu(x, scale, bias, channel_dim=C))
    ref = star_relu_ref(x, scale, bias, channel_dim=C)
    assert out.shape == x.shape and out.dtype == x.dtype
    assert jnp.allclose(out, ref, atol=1e-6, rtol=1e-6)

    # --- scalar-parameter case on 2D input: StarReLU(scale_value=1.0, bias_value=0.5)
    scale_s = jnp.asarray(1.0, dtype=jnp.float32)
    bias_s = jnp.asarray(0.5, dtype=jnp.float32)
    x2 = jax.random.normal(jax.random.PRNGKey(1), (8, 32), dtype=jnp.float32)
    out2 = jax.block_until_ready(star_relu(x2, scale_s, bias_s, channel_dim=None))
    ref2 = star_relu_ref(x2, scale_s, bias_s, channel_dim=None)
    assert jnp.allclose(out2, ref2, atol=1e-6, rtol=1e-6)

    # --- scalar-parameter case on 4D input (exercises lane-dense flatten + SMEM scalars)
    x3 = jax.random.normal(jax.random.PRNGKey(2), (N, C, H, W), dtype=jnp.float32)
    out3 = jax.block_until_ready(star_relu(x3, scale_s, bias_s, channel_dim=None))
    ref3 = star_relu_ref(x3, scale_s, bias_s, channel_dim=None)
    assert jnp.allclose(out3, ref3, atol=1e-6, rtol=1e-6)

    # --- per-channel case on 2D input (channel on the lane axis)
    C2 = 32
    x4 = jax.random.normal(jax.random.PRNGKey(3), (8, C2), dtype=jnp.float32)
    scale4 = jnp.ones((C2,), dtype=jnp.float32) * 0.6
    bias4 = jnp.ones((C2,), dtype=jnp.float32) * 0.1
    out4 = jax.block_until_ready(star_relu(x4, scale4, bias4, channel_dim=C2))
    ref4 = star_relu_ref(x4, scale4, bias4, channel_dim=C2)
    assert jnp.allclose(out4, ref4, atol=1e-6, rtol=1e-6)

    print("KERNEL_OK")
</pallas_src>

<mosaic_0001>
module attributes {stable_mosaic.version = 11 : i64} {
  func.func @_starrelu_vec_kernel(%arg0: i32, %arg1: i32, %arg2: memref<8x256xf32, #tpu.memory_space<vmem>>, %arg3: memref<8x1xf32, #tpu.memory_space<vmem>>, %arg4: memref<8x1xf32, #tpu.memory_space<vmem>>, %arg5: memref<8x256xf32, #tpu.memory_space<vmem>>) attributes {dimension_semantics = [#tpu.dimension_semantics<parallel>, #tpu.dimension_semantics<parallel>], iteration_bounds = array<i64: 1, 1>, scalar_prefetch = 0 : i64, scratch_operands = 0 : i64, tpu.core_type = #tpu.core_type<tc>, window_params = [{transform_indices = @transform_0, window_bounds = array<i64: 8, 256>}, {transform_indices = @transform_1, window_bounds = array<i64: 8, 1>}, {transform_indices = @transform_2, window_bounds = array<i64: 8, 1>}, {transform_indices = @transform_3, window_bounds = array<i64: 8, 256>}]} {
    %c0 = arith.constant 0 : index
    %c0_0 = arith.constant 0 : index
    %0 = vector.load %arg2[%c0, %c0_0] : memref<8x256xf32, #tpu.memory_space<vmem>>, vector<8x256xf32>
    %c0_1 = arith.constant 0 : index
    %c0_2 = arith.constant 0 : index
    %1 = vector.load %arg3[%c0_1, %c0_2] : memref<8x1xf32, #tpu.memory_space<vmem>>, vector<8x1xf32>
    %c0_3 = arith.constant 0 : index
    %c0_4 = arith.constant 0 : index
    %2 = vector.load %arg4[%c0_3, %c0_4] : memref<8x1xf32, #tpu.memory_space<vmem>>, vector<8x1xf32>
    %3 = vector.broadcast %1 : vector<8x1xf32> to vector<8x256xf32>
    %4 = arith.mulf %0, %3 : vector<8x256xf32>
    %cst = arith.constant 0.000000e+00 : f32
    %5 = vector.broadcast %cst : f32 to vector<8x256xf32>
    %6 = arith.maximumf %4, %5 : vector<8x256xf32>
    %7 = vector.broadcast %2 : vector<8x1xf32> to vector<8x256xf32>
    %8 = arith.mulf %0, %7 : vector<8x256xf32>
    %cst_5 = arith.constant 0.000000e+00 : f32
    %9 = vector.broadcast %cst_5 : f32 to vector<8x256xf32>
    %10 = arith.maximumf %8, %9 : vector<8x256xf32>
    %11 = arith.addf %6, %10 : vector<8x256xf32>
    %c0_6 = arith.constant 0 : index
    %c0_7 = arith.constant 0 : index
    %12 = vector.load %arg5[%c0_6, %c0_7] : memref<8x256xf32, #tpu.memory_space<vmem>>, vector<8x256xf32>
    tpu.vector_store %arg5[%c0_6, %c0_7], %11 {strides = array<i32>} : memref<8x256xf32, #tpu.memory_space<vmem>>, vector<8x256xf32>,
    return
  }
  func.func @transform_0(%arg0: i32, %arg1: i32) -> (i32, i32) {
    %c0_i32 = arith.constant 0 : i32
    return %arg0, %arg1 : i32, i32
  }
  func.func @transform_1(%arg0: i32, %arg1: i32) -> (i32, i32) {
    %c0_i32 = arith.constant 0 : i32
    %c0_i32_0 = arith.constant 0 : i32
    return %arg0, %c0_i32 : i32, i32
  }
  func.func @transform_2(%arg0: i32, %arg1: i32) -> (i32, i32) {
    %c0_i32 = arith.constant 0 : i32
    %c0_i32_0 = arith.constant 0 : i32
    return %arg0, %c0_i32 : i32, i32
  }
  func.func @transform_3(%arg0: i32, %arg1: i32) -> (i32, i32) {
    %c0_i32 = arith.constant 0 : i32
    return %arg0, %arg1 : i32, i32
  }
}

</mosaic_0001>

<bundles_post_ra>
// kernel: tpu_custom_call.1
= control target key start
LH: loop header
LB: loop body
LE: loop exit
PB: predicated region body
PF: predicated region fallthrough
CT: control target
= control target key end

     0   :  { %s123_s0 = inlined_call_operand.vmem [shape: f32[8,256], index: 0, kind: input, shape index: {}]   ;;  %s124_s1 = inlined_call_operand.vmem [shape: f32[8,1], index: 1, kind: input, shape index: {}]   ;;  %s125_s2 = inlined_call_operand.vmem [shape: f32[8,1], index: 2, kind: input, shape index: {}]   ;;  %s126_s3 = inlined_call_operand.hbm [shape: f32[8,256], index: 3, kind: output, shape index: {}]  }
   0x1   :  { %v17_v0 = vld [vmem:[%s124_s1] sm:$0xff] }
   0x2   :  { %8 = vsyncpa [#allocation3], 0  ;;  %v86_v1 = vmov 0   ;;  %v18_v2 = vld [vmem:[%s125_s2] sm:$0xff]  ;;  %v16_v5 = vld [vmem:[%s123_s0 + $0x8] sm:$0xff]  ;;  %s87_s1 = smov [#allocation2]  }
   0x3   :  { %59 = vset.pattern.permute.xlu0 %v86_v1  ;;  %v15_v4 = vld [vmem:[%s123_s0] sm:$0xff]  ;;  %s46_s2 = sshll.u32 %s87_s1, 4  ;;  %s48_s22 = sshll.u32 %s126_s3, 4  ;;  %s47_s2 = int_to_ptr.vmem [resolvable:$true] %s46_s2  ;;  %s49_s22 = int_to_ptr.hbm [resolvable:$true] %s48_s22 }
   0x4   :  { %21 = vperm.xlu0 %59, %v17_v0  }
   0xc   :  { %30 = vperm.xlu0 %59, %v18_v2  }
  0x76   :  { %v22_v3 = vpop.permute.xlu0 %21 }
  0x77   :  { %v24_v6 = vmul.f32 %v22_v3, %v15_v4  ;;  %v25_v7 = vmul.f32 %v22_v3, %v16_v5 }
  0x79   :  { %v26_v11 = vmax.f32 %v24_v6, 0.0  ;;  %v27_v12 = vmax.f32 %v25_v7, 0.0 }
  0x7e   :  { %v31_v8 = vpop.permute.xlu0 %30 }
  0x7f   :  { %v33_v9 = vmul.f32 %v31_v8, %v15_v4  ;;  %v34_v10 = vmul.f32 %v31_v8, %v16_v5 }
  0x81   :  { %v35_v13 = vmax.f32 %v33_v9, 0.0  ;;  %v36_v14 = vmax.f32 %v34_v10, 0.0 }
  0x83   :  { %v37_v15 = vadd.f32 %v35_v13, %v26_v11  ;;  %v38_v16 = vadd.f32 %v36_v14, %v27_v12 }
  0x85   :  { %39 = vst [vmem:[#allocation2] sm:$0xff] %v37_v15 }
  0x86   :  { %40 = vst [vmem:[#allocation2 + $0x8] sm:$0xff] %v38_v16 }
  0x87   :  { %51 = dma.vmem_to_hbm [thread:$0]  %s47_s2, 256, %s49_s22, [#allocation3]  }
  0x88   :  { %84 = dma.done.wait [#allocation3], 256  }
  0x89   :  { %85 = vsyncadd [#allocation3], 4294967040 }
  0x8a   :  { %56 = vsyncpa [#allocation3], 1 }

</bundles_post_ra>
